<compile_context>
chip_gen: v7x
topology: tpu7x:2x2x1
jax: 0.10.0
libtpu: 0.0.40
codegen_flags: <defaults>
</compile_context>

<pallas_src>
import functools

import jax
import jax.numpy as jnp
import numpy as np
from jax.experimental import pallas as pl
from jax.experimental.pallas import tpu as pltpu


def _prompt_kernel(imf_ref, emb_ref, ctx_ref, w1_ref, b1_ref, w2_ref, b2_ref,
                   out_ref, *, n_ctx):
    """One grid step = one block of TC classes.

    imf_ref : (TC, vis_dim)
    emb_ref : (TC, row_block, ctx_dim)  -- rows [0, row_block) of the token embedding
    ctx_ref : (n_ctx, ctx_dim)
    w1/b1/w2/b2 : meta_net parameters (constant index_map -> stay resident in VMEM)
    out_ref : (TC, row_block, ctx_dim)  -- aliased with the embedding buffer in HBM
    """
    # ---- meta_net MLP, batched over the TC classes of this block (two MXU matmuls).
    f = imf_ref[...]                                                   # (TC, vis_dim)
    h = jnp.dot(f, w1_ref[...], preferred_element_type=jnp.float32) + b1_ref[...]
    h = jnp.maximum(h, 0.0)                                            # ReLU, (TC, hidden)
    bias = jnp.dot(h, w2_ref[...], preferred_element_type=jnp.float32) + b2_ref[...]
    # bias: (TC, ctx_dim)

    # ---- ctx_shifted = ctx + bias (broadcast over the n_ctx context rows of each class).
    ctx_shifted = ctx_ref[...][None, :, :] + bias[:, None, :]          # (TC, n_ctx, ctx_dim)

    # ---- prompts = [prefix row | ctx_shifted | suffix rows ...]
    # One unmasked full-block store (prefix + padded tail rows come straight from the
    # embedding), then overwrite the n_ctx context rows.
    out_ref[...] = emb_ref[...]
    out_ref[:, 1:1 + n_ctx, :] = ctx_shifted.astype(out_ref.dtype)


def _choose_class_block(n_cls, row_block, ctx_dim, vis_dim, requested):
    """Pick the per-step class-block size TC.

    Big enough to amortize per-step overhead and feed the MXU, small enough that the
    double-buffered (in + out) embedding tiles + padded ctx_shifted temporary fit a
    conservative ~10 MiB budget (inside v5e's 16 MiB default scoped VMEM, with plenty
    of headroom on v6e/v7x).  Keeps >= 2 grid steps when possible so both v7x
    TensorCores participate under dimension_semantics=("parallel",).
    """
    itemsize = 4
    vmem_budget = 10 * 1024 * 1024
    per_class = itemsize * (
        4 * row_block * ctx_dim   # emb-in + out tiles, each double-buffered
        + 2 * vis_dim             # im_features tile, double-buffered
        + 8 * ctx_dim             # padded (TC, n_ctx->8, ctx_dim) ctx_shifted temporary
    )
    tc = max(8, min(requested, max(1, vmem_budget // per_class)))
    if tc >= n_cls:
        if n_cls > 8:
            # Split into >= 2 steps (multiple of 8 for an aligned (TC, vis_dim) block).
            tc = min(n_cls, ((-(-n_cls // 2) + 7) // 8) * 8)
        else:
            tc = n_cls            # full-array block: layout constraint satisfied trivially
    else:
        tc = max(8, (tc // 8) * 8)  # multiple of 8 -> aligned second-to-last dim
    return min(tc, n_cls)


def cap_conditional_prompt_learner(im_features, embedding, ctx, w1, b1, w2, b2,
                                   *, n_ctx, class_block=256):
    n_cls, vis_dim = im_features.shape
    _, seq_len, ctx_dim = embedding.shape
    hidden = w1.shape[1]
    assert 1 + n_ctx <= seq_len, "prompt must fit prefix + n_ctx context tokens"

    # Only the first 1+n_ctx rows of each class change; round up to the 8-sublane tile
    # (or the full seq_len if shorter) so the block satisfies TPU layout constraints.
    row_block = min(seq_len, ((1 + n_ctx + 7) // 8) * 8)

    tc = _choose_class_block(n_cls, row_block, ctx_dim, vis_dim, class_block)

    kernel = functools.partial(_prompt_kernel, n_ctx=n_ctx)

    # NOTE: embedding in_spec and out_spec MUST match exactly (aliased read-then-write).
    emb_spec = pl.BlockSpec((tc, row_block, ctx_dim), lambda i: (i, 0, 0))

    return pl.pallas_call(
        kernel,
        out_shape=jax.ShapeDtypeStruct((n_cls, seq_len, ctx_dim), embedding.dtype),
        grid_spec=pltpu.PrefetchScalarGridSpec(
            num_scalar_prefetch=0,
            grid=(pl.cdiv(n_cls, tc),),
            in_specs=[
                pl.BlockSpec((tc, vis_dim),     lambda i: (i, 0)),   # im_features block
                emb_spec,                                            # embedding head rows
                pl.BlockSpec((n_ctx, ctx_dim),  lambda i: (0, 0)),   # shared ctx
                pl.BlockSpec((vis_dim, hidden), lambda i: (0, 0)),   # meta_net.linear1 W
                pl.BlockSpec((1, hidden),       lambda i: (0, 0)),   # meta_net.linear1 b
                pl.BlockSpec((hidden, ctx_dim), lambda i: (0, 0)),   # meta_net.linear2 W
                pl.BlockSpec((1, ctx_dim),      lambda i: (0, 0)),   # meta_net.linear2 b
            ],
            out_specs=pl.BlockSpec((tc, row_block, ctx_dim), lambda i: (i, 0, 0)),
        ),
        # Output buffer IS the (ideally donated) embedding buffer: untouched suffix rows
        # never stream through VMEM.  Rows >= row_block depend on this alias.
        input_output_aliases={1: 0},
        compiler_params=pltpu.CompilerParams(
            dimension_semantics=("parallel",)),
    )(im_features, embedding, ctx, w1, b1, w2, b2)


# ----------------------------------------------------------------------------- demo glue
def _build_example(key, n_cls, vis_dim, hidden, ctx_dim, n_ctx, seq_len, vocab):
    k_imf, k_ctx, k_w1, k_b1, k_w2, k_b2, k_tok, k_emb = jax.random.split(key, 8)
    ctx_vectors = 0.02 * jax.random.normal(k_ctx, (n_ctx, ctx_dim), jnp.float32)
    w1 = 0.05 * jax.random.normal(k_w1, (vis_dim, hidden), jnp.float32)
    b1 = 0.01 * jax.random.normal(k_b1, (1, hidden), jnp.float32)
    w2 = 0.05 * jax.random.normal(k_w2, (hidden, ctx_dim), jnp.float32)
    b2 = 0.01 * jax.random.normal(k_b2, (1, ctx_dim), jnp.float32)
    im_features = jax.random.normal(k_imf, (n_cls, vis_dim), jnp.float32)
    # Stand-in for CLIP tokenization of `prompt_prefix + caption + '.'`
    # (string processing has no Pallas equivalent).
    tokenized_prompts = jax.random.randint(k_tok, (n_cls, seq_len), 0, vocab,
                                           dtype=jnp.int32)
    token_embedding_table = 0.02 * jax.random.normal(
        k_emb, (vocab, ctx_dim), jnp.float32)
    # clip_model.token_embedding(tokenized_prompts) -> plain-JAX gather (glue).
    embedding = jnp.take(token_embedding_table, tokenized_prompts, axis=0)
    return im_features, embedding, ctx_vectors, w1, b1, w2, b2


def _reference(im_features, embedding, ctx, w1, b1, w2, b2, n_ctx):
    h = jnp.maximum(im_features @ w1 + b1, 0.0)
    bias = (h @ w2 + b2)[:, None, :]                       # (n_cls, 1, ctx_dim)
    ctx_shifted = ctx[None] + bias                         # (n_cls, n_ctx, ctx_dim)
    return np.asarray(jnp.concatenate(
        [embedding[:, :1, :], ctx_shifted, embedding[:, 1 + n_ctx:, :]], axis=1))


if __name__ == "__main__":
    # Small, CLIP-like shapes (real CLIP: seq_len=77, ctx_dim=512, vis_dim=512/1024).
    n_cls   = 16     # number of captions (batch)
    vis_dim = 64     # clip_model.visual.output_dim
    hidden  = max(1, vis_dim // 16)
    ctx_dim = 128    # clip_model.ln_final.weight.shape[0]
    n_ctx   = 4      # cfg.COCOOP.N_CTX
    seq_len = 16     # tokenizer context length (77 in real CLIP)
    vocab   = 64

    # ---- main case: jit with donation so input_output_aliases elides the embedding copy.
    args = _build_example(jax.random.PRNGKey(0), n_cls, vis_dim, hidden, ctx_dim,
                          n_ctx, seq_len, vocab)
    prompts_ref = _reference(*args, n_ctx=n_ctx)          # materialized BEFORE donation

    fwd = jax.jit(functools.partial(cap_conditional_prompt_learner, n_ctx=n_ctx),
                  donate_argnums=(1,))                    # donate `embedding`
    prompts = jax.block_until_ready(fwd(*args))

    np.testing.assert_allclose(np.asarray(prompts), prompts_ref, rtol=1e-5, atol=1e-5)
    assert prompts.shape == (n_cls, seq_len, ctx_dim)

    # ---- ragged case: n_cls not a multiple of the class block; verify the partial last
    # block and the aliased writeback leave tail classes' suffix rows intact.
    n_cls_r = 13
    args_r = _build_example(jax.random.PRNGKey(1), n_cls_r, vis_dim, hidden, ctx_dim,
                            n_ctx, seq_len, vocab)
    prompts_ref_r = _reference(*args_r, n_ctx=n_ctx)
    prompts_r = jax.block_until_ready(
        cap_conditional_prompt_learner(*args_r, n_ctx=n_ctx))
    np.testing.assert_allclose(np.asarray(prompts_r), prompts_ref_r,
                               rtol=1e-5, atol=1e-5)
    assert prompts_r.shape == (n_cls_r, seq_len, ctx_dim)

    print("KERNEL_OK")
</pallas_src>

<mosaic_0001>
module attributes {stable_mosaic.version = 11 : i64} {
  func.func @_prompt_kernel(%arg0: i32, %arg1: memref<8x64xf32, #tpu.memory_space<vmem>>, %arg2: memref<8x8x128xf32, #tpu.memory_space<vmem>>, %arg3: memref<4x128xf32, #tpu.memory_space<vmem>>, %arg4: memref<64x4xf32, #tpu.memory_space<vmem>>, %arg5: memref<1x4xf32, #tpu.memory_space<vmem>>, %arg6: memref<4x128xf32, #tpu.memory_space<vmem>>, %arg7: memref<1x128xf32, #tpu.memory_space<vmem>>, %arg8: memref<8x8x128xf32, #tpu.memory_space<vmem>>) attributes {dimension_semantics = [#tpu.dimension_semantics<parallel>], iteration_bounds = array<i64: 2>, scalar_prefetch = 0 : i64, scratch_operands = 0 : i64, tpu.core_type = #tpu.core_type<tc>, window_params = [{transform_indices = @transform_0, window_bounds = array<i64: 8, 64>}, {transform_indices = @transform_1, window_bounds = array<i64: 8, 8, 128>}, {pipeline_mode = #tpu.pipeline_mode<synchronous>, transform_indices = @transform_2, window_bounds = array<i64: 4, 128>}, {pipeline_mode = #tpu.pipeline_mode<synchronous>, transform_indices = @transform_3, window_bounds = array<i64: 64, 4>}, {pipeline_mode = #tpu.pipeline_mode<synchronous>, transform_indices = @transform_4, window_bounds = array<i64: 1, 4>}, {pipeline_mode = #tpu.pipeline_mode<synchronous>, transform_indices = @transform_5, window_bounds = array<i64: 4, 128>}, {pipeline_mode = #tpu.pipeline_mode<synchronous>, transform_indices = @transform_6, window_bounds = array<i64: 1, 128>}, {transform_indices = @transform_7, window_bounds = array<i64: 8, 8, 128>}]} {
    %c0 = arith.constant 0 : index
    %c0_0 = arith.constant 0 : index
    %0 = vector.load %arg1[%c0, %c0_0] : memref<8x64xf32, #tpu.memory_space<vmem>>, vector<8x64xf32>
    %c0_1 = arith.constant 0 : index
    %c0_2 = arith.constant 0 : index
    %1 = vector.load %arg4[%c0_1, %c0_2] : memref<64x4xf32, #tpu.memory_space<vmem>>, vector<64x4xf32>
    %cst = arith.constant dense<0.000000e+00> : vector<8x4xf32>
    %2 = tpu.matmul %0, %1, %cst {dimension_numbers = #tpu.dot_dimension_numbers<[1], [0], [0], [1], [0, 0, 1, 1], [], []>} : vector<8x64xf32>, vector<64x4xf32>, vector<8x4xf32> -> vector<8x4xf32>
    %c0_3 = arith.constant 0 : index
    %c0_4 = arith.constant 0 : index
    %3 = vector.load %arg5[%c0_3, %c0_4] : memref<1x4xf32, #tpu.memory_space<vmem>>, vector<1x4xf32>
    %4 = vector.broadcast %3 : vector<1x4xf32> to vector<8x4xf32>
    %5 = arith.addf %2, %4 : vector<8x4xf32>
    %cst_5 = arith.constant 0.000000e+00 : f32
    %6 = vector.broadcast %cst_5 : f32 to vector<8x4xf32>
    %7 = arith.maximumf %5, %6 : vector<8x4xf32>
    %c0_6 = arith.constant 0 : index
    %c0_7 = arith.constant 0 : index
    %8 = vector.load %arg6[%c0_6, %c0_7] : memref<4x128xf32, #tpu.memory_space<vmem>>, vector<4x128xf32>
    %cst_8 = arith.constant dense<0.000000e+00> : vector<8x128xf32>
    %9 = tpu.matmul %7, %8, %cst_8 {dimension_numbers = #tpu.dot_dimension_numbers<[1], [0], [0], [1], [0, 0, 1, 1], [], []>} : vector<8x4xf32>, vector<4x128xf32>, vector<8x128xf32> -> vector<8x128xf32>
    %c0_9 = arith.constant 0 : index
    %c0_10 = arith.constant 0 : index
    %10 = vector.load %arg7[%c0_9, %c0_10] : memref<1x128xf32, #tpu.memory_space<vmem>>, vector<1x128xf32>
    %11 = vector.broadcast %10 : vector<1x128xf32> to vector<8x128xf32>
    %12 = arith.addf %9, %11 : vector<8x128xf32>
    %c0_11 = arith.constant 0 : index
    %c0_12 = arith.constant 0 : index
    %13 = vector.load %arg3[%c0_11, %c0_12] : memref<4x128xf32, #tpu.memory_space<vmem>>, vector<4x128xf32>
    %14 = vector.shape_cast %13 : vector<4x128xf32> to vector<1x4x128xf32>
    %15 = vector.shape_cast %12 : vector<8x128xf32> to vector<8x1x128xf32>
    %16 = vector.broadcast %14 : vector<1x4x128xf32> to vector<8x4x128xf32>
    %17 = vector.broadcast %15 : vector<8x1x128xf32> to vector<8x4x128xf32>
    %18 = arith.addf %16, %17 : vector<8x4x128xf32>
    %c0_13 = arith.constant 0 : index
    %c0_14 = arith.constant 0 : index
    %c0_15 = arith.constant 0 : index
    %19 = vector.load %arg2[%c0_13, %c0_14, %c0_15] : memref<8x8x128xf32, #tpu.memory_space<vmem>>, vector<8x8x128xf32>
    %c0_16 = arith.constant 0 : index
    %c0_17 = arith.constant 0 : index
    %c0_18 = arith.constant 0 : index
    %20 = vector.load %arg8[%c0_16, %c0_17, %c0_18] : memref<8x8x128xf32, #tpu.memory_space<vmem>>, vector<8x8x128xf32>
    tpu.vector_store %arg8[%c0_16, %c0_17, %c0_18], %19 {strides = array<i32>} : memref<8x8x128xf32, #tpu.memory_space<vmem>>, vector<8x8x128xf32>,
    %c0_19 = arith.constant 0 : index
    %c1 = arith.constant 1 : index
    %c0_20 = arith.constant 0 : index
    %21 = vector.load %arg8[%c0_19, %c1, %c0_20] : memref<8x8x128xf32, #tpu.memory_space<vmem>>, vector<8x4x128xf32>
    tpu.vector_store %arg8[%c0_19, %c1, %c0_20], %18 {strides = array<i32>} : memref<8x8x128xf32, #tpu.memory_space<vmem>>, vector<8x4x128xf32>,
    return
  }
  func.func @transform_0(%arg0: i32) -> (i32, i32) {
    %c0_i32 = arith.constant 0 : i32
    %c0_i32_0 = arith.constant 0 : i32
    return %arg0, %c0_i32 : i32, i32
  }
  func.func @transform_1(%arg0: i32) -> (i32, i32, i32) {
    %c0_i32 = arith.constant 0 : i32
    %c0_i32_0 = arith.constant 0 : i32
    %c0_i32_1 = arith.constant 0 : i32
    return %arg0, %c0_i32, %c0_i32_0 : i32, i32, i32
  }
  func.func @transform_2(%arg0: i32) -> (i32, i32) {
    %c0_i32 = arith.constant 0 : i32
    %c0_i32_0 = arith.constant 0 : i32
    %c0_i32_1 = arith.constant 0 : i32
    return %c0_i32, %c0_i32_0 : i32, i32
  }
  func.func @transform_3(%arg0: i32) -> (i32, i32) {
    %c0_i32 = arith.constant 0 : i32
    %c0_i32_0 = arith.constant 0 : i32
    %c0_i32_1 = arith.constant 0 : i32
    return %c0_i32, %c0_i32_0 : i32, i32
  }
  func.func @transform_4(%arg0: i32) -> (i32, i32) {
    %c0_i32 = arith.constant 0 : i32
    %c0_i32_0 = arith.constant 0 : i32
    %c0_i32_1 = arith.constant 0 : i32
    return %c0_i32, %c0_i32_0 : i32, i32
  }
  func.func @transform_5(%arg0: i32) -> (i32, i32) {
    %c0_i32 = arith.constant 0 : i32
    %c0_i32_0 = arith.constant 0 : i32
    %c0_i32_1 = arith.constant 0 : i32
    return %c0_i32, %c0_i32_0 : i32, i32
  }
  func.func @transform_6(%arg0: i32) -> (i32, i32) {
    %c0_i32 = arith.constant 0 : i32
    %c0_i32_0 = arith.constant 0 : i32
    %c0_i32_1 = arith.constant 0 : i32
    return %c0_i32, %c0_i32_0 : i32, i32
  }
  func.func @transform_7(%arg0: i32) -> (i32, i32, i32) {
    %c0_i32 = arith.constant 0 : i32
    %c0_i32_0 = arith.constant 0 : i32
    %c0_i32_1 = arith.constant 0 : i32
    return %arg0, %c0_i32, %c0_i32_0 : i32, i32, i32
  }
}

</mosaic_0001>

<bundles_post_ra>
// kernel: cap_conditional_prompt_learner.1
= control target key start
LH: loop header
LB: loop body
LE: loop exit
PB: predicated region body
PF: predicated region fallthrough
CT: control target
= control target key end

     0   :  { %12 = vsyncpa [#allocation3], 0  ;;  %s1234_s0 = inlined_call_operand.vmem [shape: f32[16,64], index: 0, kind: input, shape index: {}]   ;;  %s1235_s1 = inlined_call_operand.hbm [shape: f32[16,16,128], index: 1, kind: input, shape index: {}, may-alias: {1,7}]   ;;  %s1236_s2 = inlined_call_operand.vmem [shape: f32[4,128], index: 2, kind: input, shape index: {}]   ;;  %s1237_s3 = inlined_call_operand.vmem [shape: f32[64,4], index: 3, kind: input, shape index: {}]   ;;  %s1238_s4 = inlined_call_operand.vmem [shape: f32[1,4], index: 4, kind: input, shape index: {}]   ;;  %s1239_s5 = inlined_call_operand.vmem [shape: f32[4,128], index: 5, kind: input, shape index: {}]   ;;  %s1240_s6 = inlined_call_operand.vmem [shape: f32[1,128], index: 6, kind: input, shape index: {}]   ;;  %s1241_s7 = inlined_call_operand.hbm [shape: f32[16,16,128], index: 7, kind: output, shape index: {}, may-alias: {1,7}]  }
   0x1   :  { %14 = vsyncpa [#allocation3 + $0x1], 0 }
   0x2   :  { %15 = vsyncpa [#allocation4], 0 }
   0x3   :  { %17 = vsyncpa [#allocation4 + $0x1], 0  ;;  %s996_s24 = smov 0   ;;  %s998_s25 = smov 0  }
   0x4   :  { %s1000_s26 = smov 0   ;;  %s1002_s27 = smov 0  }
   0x5 LB: > { %s1017_s28 = sadd.s32 4294967295, %s942_s27   ;;  %s717_s29 = sadd.s32 4294967294, %s942_s27   ;;  %s942_s27 = sphi %s1002_s27, %s1255_s27   ;;  %s938_s26 = sphi %s1000_s26, %s1254_s26   ;;  %s934_s25 = sphi %s998_s25, %s1253_s25   ;;  %s930_s24 = sphi %s996_s24, %s1252_s24  }
   0x6   : > { %s1021_s30 = sadd.s32 1, %s942_s27   ;;  %s56_s8 = sadd.s32 1, %s938_s26 }
   0x7   : > { %s53_s9 = ssub.s32 %s942_s27, %s1021_s30  ;;  %p63_p0 = scmp.ne.s32.totalorder %s938_s26, %s934_s25 }
   0x8   : > { %p54_p1 = scmp.eq.s32.totalorder %s53_s9, 0  ;;  %p64_p2 = scmp.eq.s32.totalorder %s942_s27, 0 }
   0x9   : > { %p69_p3 = scmp.ne.s32.totalorder %s934_s25, %s930_s24  ;;  %p70_p4 = scmp.eq.s32.totalorder %s1017_s28, 0 }
   0xa   : > { %s1033_s10 = scalar_select %p54_p1, %s938_s26, %s56_s8  }
   0xb   : > { %p1035_p5 = por %p64_p2, %p63_p0  ;;  %p1039_p6 = por %p70_p4, %p69_p3 }
   0xc   : > { %p198_p7 = scmp.eq.s32.totalorder %s1017_s28, 1  ;;  %p204_p8 = scmp.eq.s32.totalorder %s717_s29, 1 }
   0xd   : > { %p802_p10 = scmp.lt.s32.totalorder %s942_s27, 2  ;;  %s246_s15 = sand.u32 1, %s938_s26  }
   0xe   : > { %p1046_p11 = por %p198_p7, %p63_p0  ;;  %p1050_p12 = por %p204_p8, %p69_p3 }
   0xf   : > { %s740_s16 = sshll.u32 %s942_s27, 11  ;;  %s720_s17 = sshll.u32 %s246_s15, 6 }
  0x10   : > { %s1245_s13 = scalar_select %p1046_p11, 1, 0 }
  0x11   : > { %s1246_s14 = scalar_select %p1050_p12, 1, 0 }
  0x12   : > { %s1059_s20 = scalar_lea.hbm %s1235_s1, %s740_s16  ;;  %s250_s21 = scalar_lea.vmem [#allocation2], %s720_s17 }
  0x13   : > { %s258_s22 = sshll.u32 %s250_s21, 4  ;;  %p1063_p13 = pnand %p802_p10, %p1035_p5  ;;  %s1067_s22 = int_to_ptr.vmem [resolvable:$true] %s258_s22 }
  0x14   : > { %s1070_s29 = scalar_lea.sflag [#allocation3], %s246_s15  ;;  %s846_s8 = scalar_lea.hbm %s1059_s20, 1024 }
  0x15   : > { %p847_p1 = scmp.ne.s32.totalorder %s1059_s20, %s846_s8  ;;  %p848_p2 = pneg %p1063_p13 }
  0x16   : > { %s851_s16 = scalar_lea.hbm %s1235_s1, 4096  ;;  %p852_p5 = scmp.lt.u32.totalorder %s1059_s20, %s1235_s1 }
  0x17   : > { %p849_p3 = pnand %p848_p2, %p847_p1  ;;  %p853_p7 = scmp.lt.u32.totalorder %s851_s16, %s846_s8 }
  0x18   : > { %p855_p10 = scmp.lt.u32.totalorder %s846_s8, %s1059_s20 }
  0x19   : > { %p850_p4 = pneg %p849_p3  ;;  %p854_p8 = por %p853_p7, %p852_p5 }
  0x1b   : > { %p856_p9 = por %p855_p10, %p854_p8 }
  0x1d   : > { %p857_p0 = pnand %p856_p9, %p850_p4 }
  0x1f   : > { %860 = shalt.err (!%p857_p0)
}
  0x20   : > { %s861_s15 = scalar_lea.vmem %s1067_s22, 1024  ;;  %s944_s19 = smov [#allocation2]  }
  0x21   : > { %p862_p1 = scmp.ne.s32.totalorder %s1067_s22, %s861_s15  ;;  %s866_s21 = sshll.u32 %s944_s19, 4  ;;  %s867_s21 = int_to_ptr.vmem [resolvable:$false] %s866_s21 }
  0x22   : > { %s868_s9 = scalar_lea.vmem %s867_s21, 2048  ;;  %p869_p11 = scmp.lt.s32.totalorder %s1067_s22, %s867_s21 }
  0x23   : > { %p864_p3 = pnand %p862_p1, %p848_p2  ;;  %p870_p5 = scmp.lt.s32.totalorder %s868_s9, %s861_s15 }
  0x25   : > { %p865_p12 = pneg %p864_p3  ;;  %p871_p7 = por %p870_p5, %p869_p11 }
  0x27   : > { %p872_p8 = pnand %p871_p7, %p865_p12 }
  0x29   : > { %875 = shalt.err (!%p872_p8)
}
  0x2a   : > { %s945_s8 = smov 256   ;;  %s946_s11 = smov 128  }
  0x2b   : > { %s947_s16 = smov 8   ;;  %p266_p9 = scmp.lt.s32.totalorder %s942_s27, 3 }
  0x2c   : > { %797 = dma.hbm_to_vmem [thread:$0]  (!%p1063_p13), %s1059_s20, 1024, %s1067_s22, %s1070_s29, %s945_s8, %s946_s11, %s947_s16  }
  0x2d   : > { %p1248_p0 = scmp.ge.s32.totalorder %s942_s27, 1 }
  0x2f   : > { %p267_p2 = pnand %p1248_p0, %p266_p9 }
  0x30   : > { %s1102_s17 = sand.u32 (!%p267_p2), 1, %s934_s25  }
  0x31   : > { %270 = sbr.rel (%p267_p2) target bundleno = 535 (0x217), region = 48  ;;  %s725_s18 = sshll.u32 (!%p267_p2), %s1102_s17, 6 }
  0x32   : > { %s273_s15 = scalar_lea.sflag (!%p267_p2), [#allocation3], %s1102_s17  ;;  %s1108_s19 = scalar_lea.vmem (!%p267_p2), [#allocation2], %s725_s18 }
  0x38   : > { %921 = dma.done.wait (%p1039_p6), %s273_s15, 1024  }
  0x39   : > { %923 = vsyncadd (%p1039_p6), %s273_s15, 4294966272  ;;  %v948_v0 = vmov 0.0|0.0   ;;  %vm949_vm0 = vmmov 0   ;;  %v950_v1 = vmov 0.0   ;;  %v318_v2 = vld [vmem:[%s1237_s3] sm:$0xff]  ;;  %v319_v3 = vld [vmem:[%s1237_s3 + $0x8] sm:$0xff]  ;;  %v500_v31 = vlaneseq }
  0x3a   : > { %778 = vmatprep.subr.bf16.mxu0 %v948_v0  ;;  %770 = vmatprep.mubr.msk.f32.mxu0 %vm949_vm0, %v950_v1  ;;  %v320_v4 = vld [vmem:[%s1237_s3 + $0x10] sm:$0xff]  ;;  %v779_v5 = vpack.c.bf16 %v319_v3, %v318_v2  ;;  %v321_v6 = vld [vmem:[%s1237_s3 + $0x18] sm:$0xff]  ;;  %p311_p6 = scmp.lt.s32.totalorder %s1017_s28, 1  ;;  %v322_v8 = vld [vmem:[%s1237_s3 + $0x20] sm:$0xff]  ;;  %vm333_vm1 = vcmask 523264   ;;  %vm420_vm2 = vcmask 1043456  }
  0x3b   : > { %773 = vmatprep.subr.mxu1 %v950_v1  ;;  %775 = vmatprep.mubr.msk.f32.mxu1 %vm949_vm0, %v950_v1  ;;  %v782_v7 = vpack.c.bf16 %v321_v6, %v320_v4  ;;  %v323_v9 = vld [vmem:[%s1237_s3 + $0x28] sm:$0xff]  ;;  %v324_v11 = vld [vmem:[%s1237_s3 + $0x30] sm:$0xff]  ;;  %v325_v12 = vld [vmem:[%s1237_s3 + $0x38] sm:$0xff]  ;;  %vm416_vm3 = vcmask 31744   ;;  %s1152_s29 = scalar_lea.vmem [#allocation5], %s725_s18  ;;  %v501_v33 = vshrl.u32 %v500_v31, 7 }
  0x3c   : > { %780 = vmatpush3.bf16.msra.mxu0 %v779_v5  ;;  %s312_s22 = scalar_select %p311_p6, %s1017_s28, 1  ;;  %v785_v10 = vpack.c.bf16 %v323_v9, %v322_v8  ;;  %v788_v13 = vpack.c.bf16 %v325_v12, %v324_v11  ;;  %v408_v15 = vld [vmem:[%s1239_s5] sm:$0xf]  ;;  %v594_v22 = vld [vmem:[%s1108_s19 + $0x8] sm:$0xff]  ;;  %v595_v23 = vld [vmem:[%s1108_s19 + $0x10] sm:$0xff] }
  0x3d   : > { %781 = vmatprep.subr.bf16.mxu0 %v948_v0  ;;  %774 = vmatpush3.msk.msra.mxu1 %vm420_vm2, %v408_v15  ;;  %v728_v16 = vld [vmem:[%s1238_s4] ss:$0 sm:$0xff]  ;;  %602 = vst [vmem:[%s1152_s29 + $0x8] sm:$0xff] %v594_v22  ;;  %603 = vst [vmem:[%s1152_s29 + $0x10] sm:$0xff] %v595_v23  ;;  %v596_v25 = vld [vmem:[%s1108_s19 + $0x18] sm:$0xff]  ;;  %v547_v41 = vsub.s32 0, %v501_v33 }
  0x3e   : > { %s727_s9 = sshll.u32 %s312_s22, 3  ;;  %v593_v21 = vld [vmem:[%s1108_s19] sm:$0xff]  ;;  %v598_v26 = vld [vmem:[%s1108_s19 + $0x28] sm:$0xff]  ;;  %v599_v27 = vld [vmem:[%s1108_s19 + $0x30] sm:$0xff]  ;;  %604 = vst [vmem:[%s1152_s29 + $0x18] sm:$0xff] %v596_v25  ;;  %s632_s8 = sshll.u32 %s1152_s29, 4  ;;  %s1186_s8 = int_to_ptr.vmem [resolvable:$true] %s632_s8 }
  0x3f   : > { %s314_s16 = scalar_lea.vmem %s1234_s0, %s727_s9  ;;  %601 = vst [vmem:[%s1152_s29] sm:$0xff] %v593_v21  ;;  %v597_v24 = vld [vmem:[%s1108_s19 + $0x20] sm:$0xff]  ;;  %v600_v28 = vld [vmem:[%s1108_s19 + $0x38] sm:$0xff]  ;;  %606 = vst [vmem:[%s1152_s29 + $0x28] sm:$0xff] %v598_v26  ;;  %v951_v29 = vmov 1966171168   ;;  %s742_s9 = sshll.u32 %s1017_s28, 11 }
  0x40   : > { %783 = vmatpush3.bf16.msra.mxu0 %v782_v7  ;;  %v317_v14 = vld [vmem:[%s314_s16] sm:$0xff]  ;;  %605 = vst [vmem:[%s1152_s29 + $0x20] sm:$0xff] %v597_v24  ;;  %607 = vst [vmem:[%s1152_s29 + $0x30] sm:$0xff] %v599_v27  ;;  %v498_v30 = vunpack.c.l.s4 %v951_v29  ;;  %s1181_s16 = scalar_lea.hbm %s1241_s7, %s742_s9  ;;  %s618_s15 = scalar_lea.sflag [#allocation4], %s1102_s17 }
  0x41   : > { %784 = vmatprep.subr.bf16.mxu0 %v948_v0  ;;  %608 = vst [vmem:[%s1152_s29 + $0x38] sm:$0xff] %v600_v28  ;;  %v730_v34 = vld [vmem:[%s1240_s6] ss:$0 sm:$0xff]  ;;  %s876_s20 = scalar_lea.vmem %s1186_s8, 1024  ;;  %p1249_p12 = scmp.ne.s32.totalorder %s1245_s13, 0 }
  0x42   : > { %v499_v32 = vunpack.c.0.s8 %v498_v30  ;;  %v494_v45 = vld [vmem:[%s1236_s2] sm:$0xf]  ;;  %p877_p11 = scmp.ne.s32.totalorder %s1186_s8, %s876_s20  ;;  %s952_s22 = smov [#allocation5]  }
  0x43   : > { %s880_s23 = sshll.u32 %s952_s22, 4  ;;  %s881_s23 = int_to_ptr.vmem [resolvable:$false] %s880_s23 }
  0x44   : > { %786 = vmatpush3.bf16.msra.mxu0 %v785_v10  ;;  %v502_v35 = vsub.s32 %v499_v32, %v501_v33  ;;  %p878_p13 = pnand %p877_p11, %p1249_p12  ;;  %s882_s18 = scalar_lea.vmem %s881_s23, 2048 }
  0x45   : > { %787 = vmatprep.subr.bf16.mxu0 %v948_v0  ;;  %p883_p10 = scmp.lt.s32.totalorder %s1186_s8, %s881_s23  ;;  %p884_p1 = scmp.lt.s32.totalorder %s882_s18, %s876_s20 }
  0x46   : > { %p879_p4 = pneg %p878_p13 }
  0x47   : > { %p885_p3 = por %p884_p1, %p883_p10 }
  0x48   : > { %789 = vmatpush3.bf16.msra.mxu0 %v788_v13 }
  0x49   : > { %p886_p5 = pnand %p885_p3, %p879_p4 }
  0x4b   : > { %771 = vmatmul.mubr.msk.f32.vlgmr.msra.gmra.mrb[0].mxu0 %vm333_vm1, %v317_v14 }
 0x11e   : > { %v403_v17 = vpop.f32.mrb[0].mxu0 }
 0x11f   : > { %v404_v18 = vadd.f32 %v728_v16, %v403_v17  ;;  %v772_v19 = vpop.f32.mrb[1].mxu0 }
 0x121   : > { %v407_v20 = vmax.f32 %v404_v18, 0.0 }
 0x123   : > { %776 = vmatmul.mubr.msk.f32.vlgmr.msra.gmra.mrb[0].mxu1 %vm416_vm3, %v407_v20 }
 0x1f6   : > { %v490_v36 = vpop.f32.mrb[0].mxu1 }
 0x1f7   : > { %v491_v37 = vadd.f32 %v730_v34, %v490_v36  ;;  %v777_v38 = vpop.f32.mrb[1].mxu1 }
 0x1f9   : > { %v496_v39 = vcombine.high %v491_v37, %v491_v37  ;;  %v503_v40 = vrot.slane %v491_v37, %v502_v35 }
 0x1fb   : > { %v510_v42 = vrot.slane %v496_v39, %v502_v35  ;;  %v511_v43 = vcombine.high %v503_v40, %v503_v40  ;;  %v519_v44 = vrot.slane %v503_v40, %v502_v35 }
 0x1fd   : > { %v512_v46 = vcombine.high %v510_v42, %v510_v42  ;;  %v526_v47 = vrot.slane %v510_v42, %v502_v35  ;;  %v533_v48 = vrot.slane %v511_v43, %v502_v35  ;;  %v541_v49 = vcombine.high %v519_v44, %v519_v44 }
 0x1fe   : > { %v548_v50 = vrot.slane %v519_v44, %v547_v41 }
 0x1ff   : > { %v540_v51 = vrot.slane %v512_v46, %v502_v35  ;;  %v542_v52 = vcombine.high %v526_v47, %v526_v47  ;;  %v543_v53 = vcombine.high %v533_v48, %v533_v48  ;;  %v552_v54 = vrot.slane %v533_v48, %v547_v41 }
 0x200   : > { %v556_v55 = vrot.slane %v541_v49, %v547_v41  ;;  %v564_v56 = vrot.slane %v526_v47, %v547_v41  ;;  %v585_v57 = vadd.f32 %v548_v50, %v494_v45 }
 0x201   : > { %v544_v58 = vcombine.high %v540_v51, %v540_v51  ;;  %v560_v59 = vrot.slane %v543_v53, %v547_v41  ;;  %v568_v60 = vrot.slane %v540_v51, %v547_v41  ;;  %v572_v61 = vrot.slane %v542_v52, %v547_v41 }
 0x202   : > { %v586_v62 = vadd.f32 %v552_v54, %v494_v45  ;;  %v587_v63 = vadd.f32 %v556_v55, %v494_v45  ;;  %v589_v0 = vadd.f32 %v564_v56, %v494_v45  ;;  %609 = vst [vmem:[%s1152_s29 + $0x1] sm:$0xf] %v585_v57 }
 0x203   : > { %v576_v1 = vrot.slane %v544_v58, %v547_v41  ;;  %v588_v2 = vadd.f32 %v560_v59, %v494_v45  ;;  %v590_v3 = vadd.f32 %v568_v60, %v494_v45  ;;  %v591_v4 = vadd.f32 %v572_v61, %v494_v45 }
 0x204   : > { %610 = vst [vmem:[%s1152_s29 + $0x9] sm:$0xf] %v586_v62  ;;  %611 = vst [vmem:[%s1152_s29 + $0x11] sm:$0xf] %v587_v63 }
 0x205   : > { %613 = vst [vmem:[%s1152_s29 + $0x21] sm:$0xf] %v589_v0  ;;  %v592_v5 = vadd.f32 %v576_v1, %v494_v45  ;;  %612 = vst [vmem:[%s1152_s29 + $0x19] sm:$0xf] %v588_v2 }
 0x206   : > { %614 = vst [vmem:[%s1152_s29 + $0x29] sm:$0xf] %v590_v3  ;;  %615 = vst [vmem:[%s1152_s29 + $0x31] sm:$0xf] %v591_v4 }
 0x207   : > { %616 = vst [vmem:[%s1152_s29 + $0x39] sm:$0xf] %v592_v5 }
 0x208   : > { %889 = shalt.err (!%p886_p5)
}
 0x209   : > { %s890_s29 = scalar_lea.hbm %s1181_s16, 1024  ;;  %s894_s12 = scalar_lea.hbm %s1241_s7, 4096 }
 0x20a   : > { %p891_p7 = scmp.ne.s32.totalorder %s1181_s16, %s890_s29  ;;  %p895_p0 = scmp.lt.u32.totalorder %s1181_s16, %s1241_s7 }
 0x20b   : > { %p896_p2 = scmp.lt.u32.totalorder %s894_s12, %s890_s29  ;;  %p898_p11 = scmp.lt.u32.totalorder %s890_s29, %s1181_s16 }
 0x20c   : > { %p892_p8 = pnand %p891_p7, %p1249_p12 }
 0x20d   : > { %p897_p6 = por %p896_p2, %p895_p0 }
 0x20e   : > { %p893_p9 = pneg %p892_p8 }
 0x20f   : > { %p899_p13 = por %p898_p11, %p897_p6 }
 0x211   : > { %p900_p4 = pnand %p899_p13, %p893_p9 }
 0x213   : > { %903 = shalt.err (!%p900_p4)
}
 0x214   : > { %s953_s11 = smov 128   ;;  %s954_s20 = smov 256  }
 0x215   : > { %s955_s22 = smov 8  }
 0x216   : > { %792 = dma.vmem_to_hbm [thread:$0]  (%p1249_p12), %s1186_s8, 1024, %s1181_s16, %s618_s15, %s953_s11, %s954_s20, %s955_s22  }
 0x217 PF: > { %s647_s23 = sand.u32 1, %s930_s24   ;;  %p1250_p10 = scmp.ne.s32.totalorder %s1246_s14, 0 }
 0x218   : > { %p1251_p1 = scmp.ge.s32.totalorder %s942_s27, 2  ;;  %s648_s18 = scalar_lea.sflag [#allocation4], %s647_s23 }
 0x21a   : > { %p799_p3 = pnand %p1251_p1, %p1250_p10 }
 0x21c   : > { %925 = dma.done.wait (!%p799_p3), %s648_s18, 1024  }
 0x21d   : > { %927 = vsyncadd (!%p799_p3), %s648_s18, 4294966272  ;;  %p20_p5 = scmp.ge.s32.totalorder %s1021_s30, 4   ;;  %s1252_s24 = smov %s934_s25 }
 0x21e   : > { %s1253_s25 = smov %s938_s26  ;;  %s1254_s26 = smov %s1033_s10 }
 0x21f   : > { %s1255_s27 = smov %s1021_s30  ;;  %22 = sbr.rel (!%p20_p5) target bundleno = 5 (0x5), region = 96 }
 0x226   :  { %653 = vsyncpa [#allocation3], 1 }
 0x227   :  { %655 = vsyncpa [#allocation3 + $0x1], 1 }
 0x228   :  { %656 = vsyncpa [#allocation4], 1 }
 0x229   :  { %658 = vsyncpa [#allocation4 + $0x1], 1 }

</bundles_post_ra>
